<compile_context>
chip_gen: v7x
topology: tpu7x:2x2x1
jax: 0.10.0
libtpu: 0.0.40
codegen_flags: <defaults>
</compile_context>

<pallas_src>
import functools

import jax
import jax.numpy as jnp
from jax.experimental import pallas as pl
from jax.experimental.pallas import tpu as pltpu

TINY_NUMBER = 1e-6
LANE = 128
SUBLANE = 8
ROW_ALIGN = 32                    # multiple of the min sublane tile for f32/bf16/int8
DEFAULT_TILE_ROWS = 4096          # (4096, 128) f32 block = 2 MiB per input stream


def _cdiv(a, b):
    return -(-a // b)


def _round_up(x, m):
    return _cdiv(x, m) * m


def _num_tensorcores():
    """Best-effort TensorCore count (2 on v7x, 1 on v5e/v6e). Falls back to 1."""
    try:
        info = pltpu.get_tpu_info()
        for name in ("num_tensorcores", "tensorcores_per_chip", "num_cores",
                     "cores_per_chip"):
            v = getattr(info, name, None)
            if isinstance(v, int) and v > 0:
                return min(int(v), 2)
    except Exception:
        pass
    return 1


def _as_rows(x, rows):
    """Lane-dense (rows, 128) view; zero-copy reshape when size is 128-aligned."""
    flat = x.reshape(-1)
    short = rows * LANE - flat.shape[0]
    if short:
        flat = jnp.pad(flat, (0, short))      # only the < 128-element tail
    return flat.reshape(rows, LANE)


def _masked_sum_kernel(pred_ref, gt_ref, mask_ref, out_ref, sq_acc,
                       *, steps, rows_valid):
    """Grid = (split, steps): accumulate masked squared-diff; scalar per split."""
    i = pl.program_id(1)

    @pl.when(i == 0)
    def _():
        sq_acc[...] = jnp.zeros_like(sq_acc)

    trows = pred_ref.shape[0]
    row0 = (pl.program_id(0) * steps + i) * trows
    rows = jax.lax.broadcasted_iota(jnp.int32, (trows, LANE), 0) + row0
    valid = rows < rows_valid                      # zeroes overhang / stale rows

    d = pred_ref[...].astype(jnp.float32) - gt_ref[...].astype(jnp.float32)
    m = mask_ref[...].astype(jnp.float32)          # 0/1 ray-validity mask (int8 stream)
    sq = jnp.where(valid, d * d * m, 0.0)

    g = trows // SUBLANE                           # VPU-only partial reduction
    sq_acc[...] += jnp.sum(sq.reshape(g, SUBLANE, LANE), axis=0)

    @pl.when(i == pl.num_programs(1) - 1)
    def _():
        out_ref[...] = jnp.sum(sq_acc[...]).reshape(1, 1, 1)


def _unmasked_sum_kernel(pred_ref, gt_ref, out_ref, sq_acc, *, steps, rows_valid):
    """Mask-free variant: only the squared-diff sum is needed."""
    i = pl.program_id(1)

    @pl.when(i == 0)
    def _():
        sq_acc[...] = jnp.zeros_like(sq_acc)

    trows = pred_ref.shape[0]
    row0 = (pl.program_id(0) * steps + i) * trows
    rows = jax.lax.broadcasted_iota(jnp.int32, (trows, LANE), 0) + row0
    valid = rows < rows_valid

    d = pred_ref[...].astype(jnp.float32) - gt_ref[...].astype(jnp.float32)
    sq = jnp.where(valid, d * d, 0.0)

    g = trows // SUBLANE
    sq_acc[...] += jnp.sum(sq.reshape(g, SUBLANE, LANE), axis=0)

    @pl.when(i == pl.num_programs(1) - 1)
    def _():
        out_ref[...] = jnp.sum(sq_acc[...]).reshape(1, 1, 1)


def masked_l2_image_loss(pred_rgb, gt_rgb, mask=None, *,
                         tile_rows=DEFAULT_TILE_ROWS):
    """Pallas implementation of img2mse(pred_rgb, gt_rgb, mask)."""
    pred_rgb = jnp.asarray(pred_rgb)
    gt_rgb = jnp.asarray(gt_rgb)
    if pred_rgb.shape != gt_rgb.shape:
        raise ValueError(f"shape mismatch {pred_rgb.shape} vs {gt_rgb.shape}")

    total = int(pred_rgb.size)                      # N * C real elements
    channels = int(pred_rgb.shape[-1])
    rows_needed = _cdiv(total, LANE)
    num_split = _num_tensorcores()

    # steps first, then a 32-aligned row tile: overhang bounded to < a tile.
    steps = max(1, _cdiv(rows_needed, num_split * tile_rows))
    trows = _round_up(max(1, _cdiv(rows_needed, num_split * steps)), ROW_ALIGN)
    last_block = _cdiv(rows_needed, trows) - 1      # clamp target for OOB blocks

    # Native-dtype streams; cast to f32 happens inside the kernel body.
    pred2d = _as_rows(pred_rgb, rows_needed)
    gt2d = _as_rows(gt_rgb, rows_needed)

    # Clamp fully-out-of-range block indices onto the last valid block; the
    # in-kernel validity mask (computed from the unclamped logical offset)
    # zeroes their contribution.
    in_idx = lambda c, i: (jnp.minimum(c * steps + i, last_block), 0)
    out_block = pl.BlockSpec((1, 1, 1), lambda c, i: (c, 0, 0))
    part_shape = jax.ShapeDtypeStruct((num_split, 1, 1), jnp.float32)

    compiler_params = pltpu.CompilerParams(
        dimension_semantics=("parallel", "arbitrary"),
        vmem_limit_bytes=32 * 1024 * 1024,
    )

    if mask is not None:
        mask = jnp.asarray(mask)
        if mask.ndim == pred_rgb.ndim and mask.shape[-1] == 1:
            mask = mask[..., 0]                     # tolerate trailing singleton
        if mask.shape != pred_rgb.shape[:-1]:
            raise ValueError(
                f"mask shape {mask.shape} does not match rays {pred_rgb.shape[:-1]}")

        # NOTE: the module's mask is a binary ray-validity mask; it is streamed
        # as int8 (0/1). Non-binary mask weights are not preserved in-kernel.
        mask_i8 = jnp.broadcast_to((mask != 0).astype(jnp.int8)[..., None],
                                   pred_rgb.shape)
        mask2d = _as_rows(mask_i8, rows_needed)     # tail padded with 0

        sq_part = pl.pallas_call(
            functools.partial(_masked_sum_kernel,
                              steps=steps, rows_valid=rows_needed),
            out_shape=part_shape,
            grid_spec=pltpu.PrefetchScalarGridSpec(
                num_scalar_prefetch=0,
                grid=(num_split, steps),
                in_specs=[
                    pl.BlockSpec((trows, LANE), in_idx),
                    pl.BlockSpec((trows, LANE), in_idx),
                    pl.BlockSpec((trows, LANE), in_idx),
                ],
                out_specs=out_block,
                scratch_shapes=[pltpu.VMEM((SUBLANE, LANE), jnp.float32)],
            ),
            compiler_params=compiler_params,
        )(pred2d, gt2d, mask2d)

        denom = jnp.sum(mask.astype(jnp.float32)) * channels   # == sum(mask) * C
        return jnp.sum(sq_part) / (denom + TINY_NUMBER)

    # Unmasked path: invalid/padded rows contribute 0; divide by true N*C.
    sq_part = pl.pallas_call(
        functools.partial(_unmasked_sum_kernel,
                          steps=steps, rows_valid=rows_needed),
        out_shape=part_shape,
        grid_spec=pltpu.PrefetchScalarGridSpec(
            num_scalar_prefetch=0,
            grid=(num_split, steps),
            in_specs=[
                pl.BlockSpec((trows, LANE), in_idx),
                pl.BlockSpec((trows, LANE), in_idx),
            ],
            out_specs=out_block,
            scratch_shapes=[pltpu.VMEM((SUBLANE, LANE), jnp.float32)],
        ),
        compiler_params=compiler_params,
    )(pred2d, gt2d)
    return jnp.sum(sq_part) / float(total)


class MaskedL2ImageLoss:
    """Mirror of the PyTorch module's forward(outputs, ray_batch)."""

    def __call__(self, outputs, ray_batch):
        pred_rgb = outputs['rgb']
        pred_mask = outputs['mask'] if 'mask' in outputs else None
        gt_rgb = ray_batch['rgb']
        return masked_l2_image_loss(pred_rgb, gt_rgb, pred_mask)


def _reference(pred_rgb, gt_rgb, mask=None):
    x = pred_rgb.astype(jnp.float32)
    y = gt_rgb.astype(jnp.float32)
    if mask is None:
        return jnp.mean((x - y) * (x - y))
    m = mask.astype(jnp.float32)
    return jnp.sum((x - y) * (x - y) * m[..., None]) / (
        jnp.sum(m) * x.shape[-1] + TINY_NUMBER)


if __name__ == "__main__":
    key = jax.random.PRNGKey(0)
    k1, k2, k3 = jax.random.split(key, 3)

    B, N_RAYS, C = 2, 128, 3          # 2*128*3 = 768 = 6*128 -> zero-copy path
    pred_rgb = jax.random.uniform(k1, (B, N_RAYS, C), dtype=jnp.float32)
    gt_rgb = jax.random.uniform(k2, (B, N_RAYS, C), dtype=jnp.float32)
    mask = (jax.random.uniform(k3, (B, N_RAYS)) > 0.3).astype(jnp.float32)

    criterion = MaskedL2ImageLoss()

    # Masked path (outputs contains 'mask').
    loss_masked = criterion({'rgb': pred_rgb, 'mask': mask}, {'rgb': gt_rgb})
    jax.block_until_ready(loss_masked)
    ref_masked = _reference(pred_rgb, gt_rgb, mask)
    assert jnp.allclose(loss_masked, ref_masked, rtol=1e-5, atol=1e-6), (
        loss_masked, ref_masked)

    # Unmasked path (no 'mask' key -> plain MSE mean).
    loss_plain = criterion({'rgb': pred_rgb}, {'rgb': gt_rgb})
    jax.block_until_ready(loss_plain)
    ref_plain = _reference(pred_rgb, gt_rgb, None)
    assert jnp.allclose(loss_plain, ref_plain, rtol=1e-5, atol=1e-6), (
        loss_plain, ref_plain)

    # Ragged element count + bf16 inputs (exercises tail pad, in-kernel cast,
    # partial boundary block and the row-validity mask).
    B2, N2 = 3, 100                   # 3*100*3 = 900 elements, not 128-aligned
    p_bf = jax.random.uniform(k1, (B2, N2, C), dtype=jnp.float32).astype(jnp.bfloat16)
    g_bf = jax.random.uniform(k2, (B2, N2, C), dtype=jnp.float32).astype(jnp.bfloat16)
    m2 = (jax.random.uniform(k3, (B2, N2)) > 0.5).astype(jnp.float32)
    loss_bf = criterion({'rgb': p_bf, 'mask': m2}, {'rgb': g_bf})
    jax.block_until_ready(loss_bf)
    ref_bf = _reference(p_bf, g_bf, m2)
    assert jnp.allclose(loss_bf, ref_bf, rtol=1e-4, atol=1e-6), (loss_bf, ref_bf)

    # Unmasked ragged bf16 path as well.
    loss_bf_plain = criterion({'rgb': p_bf}, {'rgb': g_bf})
    jax.block_until_ready(loss_bf_plain)
    ref_bf_plain = _reference(p_bf, g_bf, None)
    assert jnp.allclose(loss_bf_plain, ref_bf_plain, rtol=1e-4, atol=1e-6), (
        loss_bf_plain, ref_bf_plain)

    print("KERNEL_OK")
</pallas_src>

<mosaic_0001>
module attributes {stable_mosaic.version = 11 : i64} {
  func.func @_masked_sum_kernel(%arg0: i32, %arg1: i32, %arg2: memref<32x128xf32, #tpu.memory_space<vmem>>, %arg3: memref<32x128xf32, #tpu.memory_space<vmem>>, %arg4: memref<32x128xi8, #tpu.memory_space<vmem>>, %arg5: memref<1x1x1xf32, #tpu.memory_space<vmem>>, %arg6: memref<8x128xf32, #tpu.memory_space<vmem>>) attributes {dimension_semantics = [#tpu.dimension_semantics<parallel>, #tpu.dimension_semantics<arbitrary>], iteration_bounds = array<i64: 1, 1>, scalar_prefetch = 0 : i64, scratch_operands = 1 : i64, tpu.core_type = #tpu.core_type<tc>, window_params = [{transform_indices = @transform_0, window_bounds = array<i64: 32, 128>}, {transform_indices = @transform_1, window_bounds = array<i64: 32, 128>}, {transform_indices = @transform_2, window_bounds = array<i64: 32, 128>}, {transform_indices = @transform_3, window_bounds = array<i64: 1, 1, 1>}]} {
    %c0_i32 = arith.constant 0 : i32
    %0 = arith.cmpi eq, %arg1, %c0_i32 : i32
    %1 = arith.extui %0 : i1 to i32
    %c0_i32_0 = arith.constant 0 : i32
    %2 = arith.cmpi ne, %1, %c0_i32_0 : i32
    scf.if %2 {
      %cst_13 = arith.constant 0.000000e+00 : f32
      %28 = vector.broadcast %cst_13 : f32 to vector<8x128xf32>
      %c0_14 = arith.constant 0 : index
      %c0_15 = arith.constant 0 : index
      %29 = vector.load %arg6[%c0_14, %c0_15] : memref<8x128xf32, #tpu.memory_space<vmem>>, vector<8x128xf32>
      tpu.vector_store %arg6[%c0_14, %c0_15], %28 {strides = array<i32>} : memref<8x128xf32, #tpu.memory_space<vmem>>, vector<8x128xf32>,
    } else {
    }
    %c1_i32 = arith.constant 1 : i32
    %3 = arith.muli %arg0, %c1_i32 : i32
    %4 = arith.addi %3, %arg1 : i32
    %c32_i32 = arith.constant 32 : i32
    %5 = arith.muli %4, %c32_i32 : i32
    %6 = tpu.iota {dimensions = array<i32: 0>} : vector<32x128xi32>
    %7 = vector.broadcast %5 : i32 to vector<32x128xi32>
    %8 = arith.addi %6, %7 : vector<32x128xi32>
    %c6_i32 = arith.constant 6 : i32
    %9 = vector.broadcast %c6_i32 : i32 to vector<32x128xi32>
    %10 = arith.cmpi slt, %8, %9 : vector<32x128xi32>
    %c0 = arith.constant 0 : index
    %c0_1 = arith.constant 0 : index
    %11 = vector.load %arg2[%c0, %c0_1] : memref<32x128xf32, #tpu.memory_space<vmem>>, vector<32x128xf32>
    %c0_2 = arith.constant 0 : index
    %c0_3 = arith.constant 0 : index
    %12 = vector.load %arg3[%c0_2, %c0_3] : memref<32x128xf32, #tpu.memory_space<vmem>>, vector<32x128xf32>
    %13 = arith.subf %11, %12 : vector<32x128xf32>
    %c0_4 = arith.constant 0 : index
    %c0_5 = arith.constant 0 : index
    %14 = vector.load %arg4[%c0_4, %c0_5] : memref<32x128xi8, #tpu.memory_space<vmem>>, vector<32x128xi8>
    %15 = arith.sitofp %14 : vector<32x128xi8> to vector<32x128xf32>
    %16 = arith.mulf %13, %13 : vector<32x128xf32>
    %17 = arith.mulf %16, %15 : vector<32x128xf32>
    %cst = arith.constant 0.000000e+00 : f32
    %18 = vector.broadcast %cst : f32 to vector<32x128xf32>
    %19 = arith.select %10, %17, %18 : vector<32x128xi1>, vector<32x128xf32>
    %c0_6 = arith.constant 0 : index
    %c0_7 = arith.constant 0 : index
    %20 = vector.load %arg6[%c0_6, %c0_7] : memref<8x128xf32, #tpu.memory_space<vmem>>, vector<8x128xf32>
    %21 = vector.shape_cast %19 : vector<32x128xf32> to vector<4x8x128xf32>
    %cst_8 = arith.constant dense<0.000000e+00> : vector<8x128xf32>
    %22 = vector.multi_reduction <add>, %21, %cst_8 [0] : vector<4x8x128xf32> to vector<8x128xf32>
    %23 = arith.addf %20, %22 : vector<8x128xf32>
    %c0_9 = arith.constant 0 : index
    %c0_10 = arith.constant 0 : index
    %24 = vector.load %arg6[%c0_9, %c0_10] : memref<8x128xf32, #tpu.memory_space<vmem>>, vector<8x128xf32>
    tpu.vector_store %arg6[%c0_9, %c0_10], %23 {strides = array<i32>} : memref<8x128xf32, #tpu.memory_space<vmem>>, vector<8x128xf32>,
    %c0_i32_11 = arith.constant 0 : i32
    %25 = arith.cmpi eq, %arg1, %c0_i32_11 : i32
    %26 = arith.extui %25 : i1 to i32
    %c0_i32_12 = arith.constant 0 : i32
    %27 = arith.cmpi ne, %26, %c0_i32_12 : i32
    scf.if %27 {
      %c0_13 = arith.constant 0 : index
      %c0_14 = arith.constant 0 : index
      %28 = vector.load %arg6[%c0_13, %c0_14] : memref<8x128xf32, #tpu.memory_space<vmem>>, vector<8x128xf32>
      %29 = vector.shape_cast %28 : vector<8x128xf32> to vector<1x8x128xf32>
      %cst_15 = arith.constant dense<0.000000e+00> : vector<1xf32>
      %30 = vector.multi_reduction <add>, %29, %cst_15 [1, 2] : vector<1x8x128xf32> to vector<1xf32>
      %31 = vector.shape_cast %30 : vector<1xf32> to vector<1x1x1xf32>
      %32 = vector.extract %31[0, 0, 0] : f32 from vector<1x1x1xf32>
      %33 = vector.broadcast %32 : f32 to vector<1x1x1xf32>
      %c0_16 = arith.constant 0 : index
      %c0_17 = arith.constant 0 : index
      %c0_18 = arith.constant 0 : index
      %34 = vector.load %arg5[%c0_16, %c0_17, %c0_18] : memref<1x1x1xf32, #tpu.memory_space<vmem>>, vector<1x1x1xf32>
      tpu.vector_store %arg5[%c0_16, %c0_17, %c0_18], %33 {strides = array<i32>} : memref<1x1x1xf32, #tpu.memory_space<vmem>>, vector<1x1x1xf32>,
    } else {
    }
    return
  }
  func.func @transform_0(%arg0: i32, %arg1: i32) -> (i32, i32) {
    %c1_i32 = arith.constant 1 : i32
    %0 = arith.muli %arg0, %c1_i32 : i32
    %1 = arith.addi %0, %arg1 : i32
    %c0_i32 = arith.constant 0 : i32
    %2 = arith.minsi %1, %c0_i32 : i32
    %c0_i32_0 = arith.constant 0 : i32
    %c0_i32_1 = arith.constant 0 : i32
    return %2, %c0_i32_0 : i32, i32
  }
  func.func @transform_1(%arg0: i32, %arg1: i32) -> (i32, i32) {
    %c1_i32 = arith.constant 1 : i32
    %0 = arith.muli %arg0, %c1_i32 : i32
    %1 = arith.addi %0, %arg1 : i32
    %c0_i32 = arith.constant 0 : i32
    %2 = arith.minsi %1, %c0_i32 : i32
    %c0_i32_0 = arith.constant 0 : i32
    %c0_i32_1 = arith.constant 0 : i32
    return %2, %c0_i32_0 : i32, i32
  }
  func.func @transform_2(%arg0: i32, %arg1: i32) -> (i32, i32) {
    %c1_i32 = arith.constant 1 : i32
    %0 = arith.muli %arg0, %c1_i32 : i32
    %1 = arith.addi %0, %arg1 : i32
    %c0_i32 = arith.constant 0 : i32
    %2 = arith.minsi %1, %c0_i32 : i32
    %c0_i32_0 = arith.constant 0 : i32
    %c0_i32_1 = arith.constant 0 : i32
    return %2, %c0_i32_0 : i32, i32
  }
  func.func @transform_3(%arg0: i32, %arg1: i32) -> (i32, i32, i32) {
    %c0_i32 = arith.constant 0 : i32
    %c0_i32_0 = arith.constant 0 : i32
    %c0_i32_1 = arith.constant 0 : i32
    return %arg0, %c0_i32, %c0_i32_0 : i32, i32, i32
  }
}

</mosaic_0001>

<bundles_post_ra>
// kernel: tpu_custom_call.1
= control target key start
LH: loop header
LB: loop body
LE: loop exit
PB: predicated region body
PF: predicated region fallthrough
CT: control target
= control target key end

     0   :  { %8 = vsyncpa [#allocation4], 0  ;;  %s365_s0 = inlined_call_operand.hbm [shape: f32[6,128], index: 0, kind: input, shape index: {}]   ;;  %s366_s1 = inlined_call_operand.hbm [shape: f32[6,128], index: 1, kind: input, shape index: {}]   ;;  %s367_s2 = inlined_call_operand.vmem [shape: s8[6,128], index: 2, kind: input, shape index: {}]   ;;  %s368_s3 = inlined_call_operand.hbm [shape: f32[1,1,1], index: 3, kind: output, shape index: {}]  }
   0x1   :  { %9 = vsyncpa [#allocation7], 0 }
   0x2   :  { %10 = vsyncpa [#allocation5], 0 }
   0x3   :  { %21 = vsyncadd [#allocation4], 384  ;;  %s301_s12 = smov [#allocation3]   ;;  %s229_s16 = scalar_lea.hbm %s365_s0, 128 }
   0x4   :  { %s26_s13 = sshll.u32 %s301_s12, 4  ;;  %p230_p0 = scmp.ne.s32.totalorder %s365_s0, %s229_s16  ;;  %s27_s13 = int_to_ptr.vmem [resolvable:$true] %s26_s13 }
   0x5   :  { %p233_p1 = scmp.lt.u32.totalorder %s229_s16, %s365_s0 }
   0x7   :  { %p235_p2 = pnand %p233_p1, %p230_p0 }
   0x9   :  { %238 = shalt.err (!%p235_p2)
}
   0xa   :  { %s239_s21 = scalar_lea.vmem %s27_s13, 128  ;;  %s243_s22 = scalar_lea.vmem %s27_s13, 512 }
   0xb   :  { %p240_p3 = scmp.ne.s32.totalorder %s27_s13, %s239_s21  ;;  %p244_p4 = scmp.lt.s32.totalorder %s27_s13, %s27_s13 }
   0xc   :  { %p245_p5 = scmp.lt.s32.totalorder %s243_s22, %s239_s21 }
   0xe   :  { %p246_p6 = por %p245_p5, %p244_p4 }
  0x10   :  { %p247_p7 = pnand %p246_p6, %p240_p3 }
  0x12   :  { %250 = shalt.err (!%p247_p7)
}
  0x13   :  { %s302_s23 = smov 128   ;;  %s303_s24 = smov 8  }
  0x14   :  { %32 = dma.hbm_to_vmem [thread:$0]  %s365_s0, 128, %s27_s13, [#allocation4], %s302_s23, %s302_s23, %s303_s24  }
  0x15   :  { %43 = vsyncadd [#allocation7], 384  ;;  %s304_s27 = smov [#allocation6]   ;;  %s251_s4 = scalar_lea.hbm %s366_s1, 128 }
  0x16   :  { %s48_s28 = sshll.u32 %s304_s27, 4  ;;  %p252_p8 = scmp.ne.s32.totalorder %s366_s1, %s251_s4  ;;  %s49_s28 = int_to_ptr.vmem [resolvable:$true] %s48_s28 }
  0x17   :  { %p255_p9 = scmp.lt.u32.totalorder %s251_s4, %s366_s1 }
  0x19   :  { %p257_p10 = pnand %p255_p9, %p252_p8 }
  0x1b   :  { %260 = shalt.err (!%p257_p10)
}
  0x1c   :  { %s261_s9 = scalar_lea.vmem %s49_s28, 128  ;;  %s265_s0 = scalar_lea.vmem %s49_s28, 512 }
  0x1d   :  { %p262_p11 = scmp.ne.s32.totalorder %s49_s28, %s261_s9  ;;  %p266_p12 = scmp.lt.s32.totalorder %s49_s28, %s49_s28 }
  0x1e   :  { %p267_p13 = scmp.lt.s32.totalorder %s265_s0, %s261_s9 }
  0x20   :  { %p268_p0 = por %p267_p13, %p266_p12 }
  0x22   :  { %p269_p1 = pnand %p268_p0, %p262_p11 }
  0x24   :  { %272 = shalt.err (!%p269_p1)
}
  0x25   :  { %54 = dma.hbm_to_vmem [thread:$0]  %s366_s1, 128, %s49_s28, [#allocation7], %s302_s23, %s302_s23, %s303_s24  }
  0x26   :  { %295 = dma.done.wait [#allocation4], 512  }
  0x27   :  { %296 = vsyncadd [#allocation4], 4294966784 }
  0x28   :  { %297 = dma.done.wait [#allocation7], 512  }
  0x29   :  { %298 = vsyncadd [#allocation7], 4294966784  ;;  %v124_v0 = vlaneseq  ;;  %v138_v2 = vld [vmem:[#allocation3] sm:$0xff]  ;;  %s305_s1 = smov [#allocation8]   ;;  %vm194_vm1 = vcmask 0  }
  0x2a   :  { %v142_v3 = vld [vmem:[#allocation6] sm:$0xff]  ;;  %s202_s14 = sshll.u32 %s305_s1, 4  ;;  %s203_s14 = int_to_ptr.vmem [resolvable:$true] %s202_s14 }
  0x2b   :  { %v125_v1 = vshrl.u32 %v124_v0, 7  ;;  %v150_v4 = vld [vmem:[%s367_s2] sm:$0x3]  ;;  %v146_v5 = vsub.f32 %v138_v2, %v142_v3  ;;  %s273_s15 = scalar_lea.vmem %s203_s14, 16  ;;  %s277_s16 = scalar_lea.vmem %s203_s14, 32 }
  0x2c   :  { %v154_v6 = vunpack.c.0.s8 %v150_v4  ;;  %p274_p2 = scmp.ne.s32.totalorder %s203_s14, %s273_s15  ;;  %p278_p3 = scmp.lt.s32.totalorder %s203_s14, %s203_s14 }
  0x2d   :  { %v162_v8 = vmul.f32 %v146_v5, %v146_v5  ;;  %vm134_vm0 = vcmp.lt.s32.totalorder %v125_v1, 6  ;;  %p279_p4 = scmp.lt.s32.totalorder %s277_s16, %s273_s15 }
  0x2e   :  { %v158_v7 = vcvt.s32.f32 %v154_v6 }
  0x2f   :  { %p280_p5 = por %p279_p4, %p278_p3 }
  0x30   :  { %v166_v9 = vmul.f32 %v162_v8, %v158_v7 }
  0x31   :  { %p281_p6 = pnand %p280_p5, %p274_p2 }
  0x32   :  { %v170_v10 = vsel %vm134_vm0, %v166_v9, 0.0 }
  0x33   :  { %184 = vadd.xlane.f32.xlu0 %v170_v10 }
  0xc0   :  { %v185_v11 = vpop.xlane.xlu0 %184 }
  0xc1   :  { %v186_v12 = vrot.slane %v185_v11, 4 }
  0xc3   :  { %v187_v13 = vadd.f32 %v186_v12, %v185_v11 }
  0xc5   :  { %v188_v14 = vrot.slane %v187_v13, 2 }
  0xc7   :  { %v189_v15 = vadd.f32 %v188_v14, %v187_v13 }
  0xc9   :  { %v190_v16 = vrot.slane %v189_v15, 1 }
  0xcb   :  { %v191_v17 = vadd.f32 %v190_v16, %v189_v15 }
  0xcd   :  { %222 = vpush %v191_v17 }
  0xfe   :  { %s223_s2 = spop %222 }
  0xff   :  { %v193_v18 = vstv %s223_s2 }
 0x100   :  { %195 = vst.msk [vmem:[#allocation8] sm:$0x1] %vm194_vm1, %v193_v18 }
 0x101   :  { %284 = shalt.err (!%p281_p6)
}
 0x102   :  { %s285_s19 = scalar_lea.hbm %s368_s3, 16 }
 0x103   :  { %p286_p7 = scmp.ne.s32.totalorder %s368_s3, %s285_s19  ;;  %p289_p8 = scmp.lt.u32.totalorder %s285_s19, %s368_s3 }
 0x105   :  { %p291_p9 = pnand %p289_p8, %p286_p7 }
 0x107   :  { %294 = shalt.err (!%p291_p9)
}
 0x108   :  { %205 = dma.vmem_to_hbm [thread:$0]  %s203_s14, 16, %s368_s3, [#allocation5]  }
 0x109   :  { %299 = dma.done.wait [#allocation5], 16  }
 0x10a   :  { %300 = vsyncadd [#allocation5], 4294967280 }
 0x10b   :  { %209 = vsyncpa [#allocation4], 1 }
 0x10c   :  { %210 = vsyncpa [#allocation7], 1 }
 0x10d   :  { %211 = vsyncpa [#allocation5], 1 }

</bundles_post_ra>
